<compile_context>
chip_gen: v7x
topology: tpu7x:2x2x1
jax: 0.10.0
libtpu: 0.0.40
codegen_flags: <defaults>
</compile_context>

<pallas_src>
import functools

import jax
import jax.numpy as jnp
from jax import lax
from jax.experimental import pallas as pl
from jax.experimental.pallas import tpu as pltpu

TRIPLET_MARGIN = 5.0
COSINE_EPS = 1e-8  # matches torch.nn.functional.cosine_similarity eps


def _triplet_loss_kernel(a_ref, p_ref, n_ref, out_ref, *, batch, tile_b):
    a = a_ref[...].astype(jnp.float32)
    p = p_ref[...].astype(jnp.float32)
    n = n_ref[...].astype(jnp.float32)

    # Squared norms clamped at eps^2  ==  max(norm, eps) of torch cosine_similarity.
    eps2 = COSINE_EPS * COSINE_EPS
    a2 = jnp.maximum(jnp.sum(a * a, axis=-1, keepdims=True), eps2)
    p2 = jnp.maximum(jnp.sum(p * p, axis=-1, keepdims=True), eps2)
    n2 = jnp.maximum(jnp.sum(n * n, axis=-1, keepdims=True), eps2)

    dot_ap = jnp.sum(a * p, axis=-1, keepdims=True)
    dot_an = jnp.sum(a * n, axis=-1, keepdims=True)

    # rsqrt runs on the EUP (own VLIW slot); avoids sqrt + true-divide on the VALU.
    cos_ap = dot_ap * lax.rsqrt(a2 * p2)
    cos_an = dot_an * lax.rsqrt(a2 * n2)

    # TripletDistanceMetric.COSINE (as defined in the module): 1 - relu(cos_sim)
    dist_pos = 1.0 - jnp.maximum(cos_ap, 0.0)
    dist_neg = 1.0 - jnp.maximum(cos_an, 0.0)

    losses = jnp.maximum(dist_pos - dist_neg + TRIPLET_MARGIN, 0.0)  # (tb, 1)

    # Explicitly mask padded rows of a ragged last tile before the partial sum
    # (their input data is unspecified, may even be NaN; where() is NaN-safe).
    rows = pl.program_id(0) * tile_b + lax.broadcasted_iota(jnp.int32, losses.shape, 0)
    losses = jnp.where(rows < batch, losses, 0.0)

    # One scalar per tile -> no lane-sparse masked stores, no per-row writeback.
    out_ref[...] = jnp.full((1, 1, 1), jnp.sum(losses), dtype=jnp.float32)


def _tpu_vmem_capacity_bytes():
    """Physical VMEM of the current chip; conservative fallback if unknown."""
    try:
        cap = getattr(pltpu.get_tpu_info(), "vmem_capacity_bytes", None)
        if cap:
            return int(cap)
    except Exception:
        pass
    return 64 * 1024 * 1024  # v7x-sized fallback: safe on every generation


def _pick_tile_rows(D, itemsize, sublane, budget_bytes):
    """Rows per tile so pipeline buffers + f32 temporaries fit the budget.

    Per-row VMEM footprint:
      * 3 inputs x 2 pipeline buffers in the input dtype : 6 * D * itemsize
      * ~4 row-length f32 temporaries in the body
        (upcasts / elementwise products before the lane reduce): 16 * D
    """
    per_row = 6 * D * itemsize + 16 * D
    tb = budget_bytes // per_row
    return max(sublane, int(tb))


def triplet_loss(rep_anchor, rep_pos, rep_neg, *, tile_b=None):
    """Mean triplet loss (cosine metric), batch-tiled Pallas kernel."""
    assert rep_anchor.shape == rep_pos.shape == rep_neg.shape
    assert rep_anchor.dtype == rep_pos.dtype == rep_neg.dtype
    B, D = rep_anchor.shape

    itemsize = jnp.dtype(rep_anchor.dtype).itemsize
    sublane = 8 * max(1, 4 // itemsize)  # 8 for f32, 16 for bf16

    # Generation-aware VMEM budget: ~3/4 of physical VMEM as the scoped limit
    # (48 MiB on v7x's 64 MiB, capped at 64 MiB on v5e/v6e's 128 MiB), half of
    # which is budgeted for inputs + in-kernel f32 temporaries.
    vmem_cap = _tpu_vmem_capacity_bytes()
    vmem_limit = min((vmem_cap * 3) // 4, 64 * 1024 * 1024)
    budget = vmem_limit // 2

    if tile_b is None:
        tile_b = _pick_tile_rows(D, itemsize, sublane, budget)

    if tile_b >= B:
        if B > sublane:
            # Keep >= 2 grid steps: lets v7x shard the parallel batch axis
            # across both TensorCores and keeps DMA/compute overlap alive.
            half = (B + 1) // 2
            tb = ((half + sublane - 1) // sublane) * sublane
        else:
            tb = B  # single full-batch tile (block == full dims is always legal)
    else:
        tb = max(sublane, (int(tile_b) // sublane) * sublane)

    num_tiles = (B + tb - 1) // tb
    in_spec = pl.BlockSpec((tb, D), lambda i: (i, 0))

    kernel = functools.partial(_triplet_loss_kernel, batch=B, tile_b=tb)

    partials = pl.pallas_call(
        kernel,
        out_shape=jax.ShapeDtypeStruct((num_tiles, 1, 1), jnp.float32),
        grid=(num_tiles,),
        in_specs=[in_spec, in_spec, in_spec],
        out_specs=pl.BlockSpec((1, 1, 1), lambda i: (i, 0, 0)),
        compiler_params=pltpu.CompilerParams(
            dimension_semantics=("parallel",),
            vmem_limit_bytes=vmem_limit),
    )(rep_anchor, rep_pos, rep_neg)

    # Tiny epilogue: sum of num_tiles scalars, divide by the true batch size.
    return jnp.sum(partials) / jnp.float32(B)


def triplet_loss_ref(rep_anchor, rep_pos, rep_neg):
    """Plain-JAX reference for verification (module semantics, f32 compute)."""
    a = rep_anchor.astype(jnp.float32)
    p = rep_pos.astype(jnp.float32)
    n = rep_neg.astype(jnp.float32)

    def cos_dist(x, y):
        xn = jnp.maximum(jnp.linalg.norm(x, axis=-1), COSINE_EPS)
        yn = jnp.maximum(jnp.linalg.norm(y, axis=-1), COSINE_EPS)
        cos = jnp.sum(x * y, axis=-1) / (xn * yn)
        return 1.0 - jnp.maximum(cos, 0.0)

    d_pos = cos_dist(a, p)
    d_neg = cos_dist(a, n)
    return jnp.mean(jnp.maximum(d_pos - d_neg + TRIPLET_MARGIN, 0.0))


if __name__ == "__main__":
    key = jax.random.PRNGKey(0)
    k_a, k_p, k_n = jax.random.split(key, 3)
    B, D = 20, 128  # lane-dense hidden dim; B chosen to exercise ragged tiles

    rep_anchor = jax.random.normal(k_a, (B, D), dtype=jnp.float32)
    rep_pos = jax.random.normal(k_p, (B, D), dtype=jnp.float32)
    rep_neg = jax.random.normal(k_n, (B, D), dtype=jnp.float32)

    ref = triplet_loss_ref(rep_anchor, rep_pos, rep_neg)

    # Explicit small tile: 3 tiles, ragged last tile -> exercises in-kernel mask.
    loss = triplet_loss(rep_anchor, rep_pos, rep_neg, tile_b=8)
    jax.block_until_ready(loss)
    assert jnp.allclose(loss, ref, rtol=1e-5, atol=1e-5), (loss, ref)

    # Auto tile: budget picks a huge tile, wrapper splits it into >=2 steps.
    loss_auto = triplet_loss(rep_anchor, rep_pos, rep_neg)
    jax.block_until_ready(loss_auto)
    assert jnp.allclose(loss_auto, ref, rtol=1e-5, atol=1e-5), (loss_auto, ref)

    # bf16 inputs (half the HBM traffic); compute stays f32 inside the kernel.
    a16 = rep_anchor.astype(jnp.bfloat16)
    p16 = rep_pos.astype(jnp.bfloat16)
    n16 = rep_neg.astype(jnp.bfloat16)
    loss16 = triplet_loss(a16, p16, n16)
    jax.block_until_ready(loss16)
    ref16 = triplet_loss_ref(a16, p16, n16)
    assert jnp.allclose(loss16, ref16, rtol=1e-4, atol=1e-4), (loss16, ref16)

    print("KERNEL_OK")
</pallas_src>

<mosaic_0001>
module attributes {stable_mosaic.version = 11 : i64} {
  func.func @_triplet_loss_kernel(%arg0: i32, %arg1: memref<8x128xf32, #tpu.memory_space<vmem>>, %arg2: memref<8x128xf32, #tpu.memory_space<vmem>>, %arg3: memref<8x128xf32, #tpu.memory_space<vmem>>, %arg4: memref<1x1x1xf32, #tpu.memory_space<vmem>>) attributes {dimension_semantics = [#tpu.dimension_semantics<parallel>], iteration_bounds = array<i64: 3>, scalar_prefetch = 0 : i64, scratch_operands = 0 : i64, tpu.core_type = #tpu.core_type<tc>, window_params = [{transform_indices = @transform_0, window_bounds = array<i64: 8, 128>}, {transform_indices = @transform_1, window_bounds = array<i64: 8, 128>}, {transform_indices = @transform_2, window_bounds = array<i64: 8, 128>}, {transform_indices = @transform_3, window_bounds = array<i64: 1, 1, 1>}]} {
    %c0 = arith.constant 0 : index
    %c0_0 = arith.constant 0 : index
    %0 = vector.load %arg1[%c0, %c0_0] : memref<8x128xf32, #tpu.memory_space<vmem>>, vector<8x128xf32>
    %c0_1 = arith.constant 0 : index
    %c0_2 = arith.constant 0 : index
    %1 = vector.load %arg2[%c0_1, %c0_2] : memref<8x128xf32, #tpu.memory_space<vmem>>, vector<8x128xf32>
    %c0_3 = arith.constant 0 : index
    %c0_4 = arith.constant 0 : index
    %2 = vector.load %arg3[%c0_3, %c0_4] : memref<8x128xf32, #tpu.memory_space<vmem>>, vector<8x128xf32>
    %3 = arith.mulf %0, %0 : vector<8x128xf32>
    %cst = arith.constant dense<0.000000e+00> : vector<8xf32>
    %4 = vector.multi_reduction <add>, %3, %cst [1] : vector<8x128xf32> to vector<8xf32>
    %5 = vector.shape_cast %4 : vector<8xf32> to vector<8x1xf32>
    %cst_5 = arith.constant 1.000000e-16 : f32
    %6 = vector.broadcast %cst_5 : f32 to vector<8x1xf32>
    %7 = arith.maximumf %5, %6 : vector<8x1xf32>
    %8 = arith.mulf %1, %1 : vector<8x128xf32>
    %cst_6 = arith.constant dense<0.000000e+00> : vector<8xf32>
    %9 = vector.multi_reduction <add>, %8, %cst_6 [1] : vector<8x128xf32> to vector<8xf32>
    %10 = vector.shape_cast %9 : vector<8xf32> to vector<8x1xf32>
    %cst_7 = arith.constant 1.000000e-16 : f32
    %11 = vector.broadcast %cst_7 : f32 to vector<8x1xf32>
    %12 = arith.maximumf %10, %11 : vector<8x1xf32>
    %13 = arith.mulf %2, %2 : vector<8x128xf32>
    %cst_8 = arith.constant dense<0.000000e+00> : vector<8xf32>
    %14 = vector.multi_reduction <add>, %13, %cst_8 [1] : vector<8x128xf32> to vector<8xf32>
    %15 = vector.shape_cast %14 : vector<8xf32> to vector<8x1xf32>
    %cst_9 = arith.constant 1.000000e-16 : f32
    %16 = vector.broadcast %cst_9 : f32 to vector<8x1xf32>
    %17 = arith.maximumf %15, %16 : vector<8x1xf32>
    %18 = arith.mulf %0, %1 : vector<8x128xf32>
    %cst_10 = arith.constant dense<0.000000e+00> : vector<8xf32>
    %19 = vector.multi_reduction <add>, %18, %cst_10 [1] : vector<8x128xf32> to vector<8xf32>
    %20 = vector.shape_cast %19 : vector<8xf32> to vector<8x1xf32>
    %21 = arith.mulf %0, %2 : vector<8x128xf32>
    %cst_11 = arith.constant dense<0.000000e+00> : vector<8xf32>
    %22 = vector.multi_reduction <add>, %21, %cst_11 [1] : vector<8x128xf32> to vector<8xf32>
    %23 = vector.shape_cast %22 : vector<8xf32> to vector<8x1xf32>
    %24 = arith.mulf %7, %12 : vector<8x1xf32>
    %25 = math.rsqrt %24 : vector<8x1xf32>
    %26 = arith.mulf %20, %25 : vector<8x1xf32>
    %27 = arith.mulf %7, %17 : vector<8x1xf32>
    %28 = math.rsqrt %27 : vector<8x1xf32>
    %29 = arith.mulf %23, %28 : vector<8x1xf32>
    %cst_12 = arith.constant 0.000000e+00 : f32
    %30 = vector.broadcast %cst_12 : f32 to vector<8x1xf32>
    %31 = arith.maximumf %26, %30 : vector<8x1xf32>
    %cst_13 = arith.constant 1.000000e+00 : f32
    %32 = vector.broadcast %cst_13 : f32 to vector<8x1xf32>
    %33 = arith.subf %32, %31 : vector<8x1xf32>
    %cst_14 = arith.constant 0.000000e+00 : f32
    %34 = vector.broadcast %cst_14 : f32 to vector<8x1xf32>
    %35 = arith.maximumf %29, %34 : vector<8x1xf32>
    %cst_15 = arith.constant 1.000000e+00 : f32
    %36 = vector.broadcast %cst_15 : f32 to vector<8x1xf32>
    %37 = arith.subf %36, %35 : vector<8x1xf32>
    %38 = arith.subf %33, %37 : vector<8x1xf32>
    %cst_16 = arith.constant 5.000000e+00 : f32
    %39 = vector.broadcast %cst_16 : f32 to vector<8x1xf32>
    %40 = arith.addf %38, %39 : vector<8x1xf32>
    %cst_17 = arith.constant 0.000000e+00 : f32
    %41 = vector.broadcast %cst_17 : f32 to vector<8x1xf32>
    %42 = arith.maximumf %40, %41 : vector<8x1xf32>
    %c8_i32 = arith.constant 8 : i32
    %43 = arith.muli %arg0, %c8_i32 : i32
    %44 = tpu.iota {dimensions = array<i32: 0>} : vector<8x1xi32>
    %45 = vector.broadcast %43 : i32 to vector<8x1xi32>
    %46 = arith.addi %45, %44 : vector<8x1xi32>
    %c20_i32 = arith.constant 20 : i32
    %47 = vector.broadcast %c20_i32 : i32 to vector<8x1xi32>
    %48 = arith.cmpi slt, %46, %47 : vector<8x1xi32>
    %cst_18 = arith.constant 0.000000e+00 : f32
    %49 = vector.broadcast %cst_18 : f32 to vector<8x1xf32>
    %50 = arith.select %48, %42, %49 : vector<8x1xi1>, vector<8x1xf32>
    %51 = vector.shape_cast %50 : vector<8x1xf32> to vector<1x8x1xf32>
    %cst_19 = arith.constant dense<0.000000e+00> : vector<1xf32>
    %52 = vector.multi_reduction <add>, %51, %cst_19 [1, 2] : vector<1x8x1xf32> to vector<1xf32>
    %53 = vector.shape_cast %52 : vector<1xf32> to vector<1x1x1xf32>
    %54 = vector.extract %53[0, 0, 0] : f32 from vector<1x1x1xf32>
    %55 = vector.broadcast %54 : f32 to vector<1x1x1xf32>
    %c0_20 = arith.constant 0 : index
    %c0_21 = arith.constant 0 : index
    %c0_22 = arith.constant 0 : index
    %56 = vector.load %arg4[%c0_20, %c0_21, %c0_22] : memref<1x1x1xf32, #tpu.memory_space<vmem>>, vector<1x1x1xf32>
    tpu.vector_store %arg4[%c0_20, %c0_21, %c0_22], %55 {strides = array<i32>} : memref<1x1x1xf32, #tpu.memory_space<vmem>>, vector<1x1x1xf32>,
    return
  }
  func.func @transform_0(%arg0: i32) -> (i32, i32) {
    %c0_i32 = arith.constant 0 : i32
    %c0_i32_0 = arith.constant 0 : i32
    return %arg0, %c0_i32 : i32, i32
  }
  func.func @transform_1(%arg0: i32) -> (i32, i32) {
    %c0_i32 = arith.constant 0 : i32
    %c0_i32_0 = arith.constant 0 : i32
    return %arg0, %c0_i32 : i32, i32
  }
  func.func @transform_2(%arg0: i32) -> (i32, i32) {
    %c0_i32 = arith.constant 0 : i32
    %c0_i32_0 = arith.constant 0 : i32
    return %arg0, %c0_i32 : i32, i32
  }
  func.func @transform_3(%arg0: i32) -> (i32, i32, i32) {
    %c0_i32 = arith.constant 0 : i32
    %c0_i32_0 = arith.constant 0 : i32
    %c0_i32_1 = arith.constant 0 : i32
    return %arg0, %c0_i32, %c0_i32_0 : i32, i32, i32
  }
}

</mosaic_0001>

<bundles_post_ra>
// kernel: tpu_custom_call.1
= control target key start
LH: loop header
LB: loop body
LE: loop exit
PB: predicated region body
PF: predicated region fallthrough
CT: control target
= control target key end

     0   :  { %8 = vsyncpa [#allocation3], 0  ;;  %s826_s0 = inlined_call_operand.hbm [shape: f32[20,128], index: 0, kind: input, shape index: {}]   ;;  %s827_s1 = inlined_call_operand.hbm [shape: f32[20,128], index: 1, kind: input, shape index: {}]   ;;  %s828_s2 = inlined_call_operand.hbm [shape: f32[20,128], index: 2, kind: input, shape index: {}]   ;;  %s829_s3 = inlined_call_operand.vmem [shape: f32[3,1,1], index: 3, kind: output, shape index: {}]  }
   0x1   :  { %10 = vsyncpa [#allocation3 + $0x1], 0 }
   0x2   :  { %11 = vsyncpa [#allocation5], 0 }
   0x3   :  { %13 = vsyncpa [#allocation5 + $0x1], 0  ;;  %s636_s12 = smov 0   ;;  %s638_s13 = smov 0  }
   0x4   :  { %s640_s14 = smov 0   ;;  %s642_s15 = smov 0  }
   0x5 LB: > { %s655_s16 = sadd.s32 4294967295, %s611_s15   ;;  %s658_s17 = sadd.s32 1, %s611_s15   ;;  %s611_s15 = sphi %s642_s15, %s844_s15   ;;  %s607_s14 = sphi %s640_s14, %s843_s14   ;;  %s603_s13 = sphi %s638_s13, %s842_s13   ;;  %s599_s12 = sphi %s636_s12, %s841_s12  }
   0x6   : > { %s23_s18 = ssub.s32 %s611_s15, %s658_s17  ;;  %s26_s19 = sadd.s32 1, %s607_s14 }
   0x7   : > { %p24_p0 = scmp.eq.s32.totalorder %s23_s18, 0  ;;  %p33_p1 = scmp.ne.s32.totalorder %s607_s14, %s603_s13 }
   0x8   : > { %p34_p2 = scmp.eq.s32.totalorder %s611_s15, 0  ;;  %p39_p3 = scmp.ne.s32.totalorder %s603_s13, %s599_s12 }
   0x9   : > { %s668_s20 = scalar_select %p24_p0, %s607_s14, %s26_s19  }
   0xa   : > { %p35_p4 = por %p34_p2, %p33_p1  ;;  %p40_p5 = scmp.eq.s32.totalorder %s655_s16, 0 }
   0xb   : > { %p446_p6 = scmp.lt.s32.totalorder %s611_s15, 3  ;;  %s141_s22 = sand.u32 1, %s607_s14  }
   0xc   : > { %p672_p7 = por %p40_p5, %p39_p3  ;;  %s679_s23 = sshll.u32 %s141_s22, 3 }
   0xd   : > { %s682_s24 = sshll.u32 %s611_s15, 7  ;;  %p684_p8 = pnand %p446_p6, %p35_p4 }
   0xe   : > { %s832_s21 = scalar_select %p672_p7, 1, 0 }
   0xf   : > { %s833_s25 = scalar_select %p684_p8, 1, 0 }
  0x10   : > { %s159_s26 = sand.u32 1, %s611_s15   ;;  %s693_s29 = scalar_lea.hbm %s827_s1, %s682_s24 }
  0x11   : > { %s163_s30 = scalar_lea.vmem [#allocation4], %s679_s23  ;;  %s700_s5 = scalar_lea.sflag [#allocation5], %s159_s26 }
  0x12   : > { %s170_s4 = sshll.u32 %s163_s30, 4  ;;  %s483_s6 = scalar_lea.hbm %s693_s29, 128  ;;  %s697_s4 = int_to_ptr.vmem [resolvable:$true] %s170_s4 }
  0x13   : > { %p484_p11 = scmp.ne.s32.totalorder %s693_s29, %s483_s6  ;;  %p706_p12 = pneg %p684_p8 }
  0x14   : > { %s488_s10 = scalar_lea.hbm %s827_s1, 384  ;;  %p489_p1 = scmp.lt.u32.totalorder %s693_s29, %s827_s1 }
  0x15   : > { %p486_p13 = pnand %p706_p12, %p484_p11  ;;  %p490_p2 = scmp.lt.u32.totalorder %s488_s10, %s483_s6 }
  0x16   : > { %p492_p4 = scmp.lt.u32.totalorder %s483_s6, %s693_s29 }
  0x17   : > { %p487_p0 = pneg %p486_p13  ;;  %p491_p3 = por %p490_p2, %p489_p1 }
  0x19   : > { %p493_p5 = por %p492_p4, %p491_p3 }
  0x1b   : > { %p494_p6 = pnand %p493_p5, %p487_p0 }
  0x1d   : > { %497 = shalt.err (!%p494_p6)
}
  0x1e   : > { %s498_s18 = scalar_lea.vmem %s697_s4, 128  ;;  %s613_s19 = smov [#allocation4]  }
  0x1f   : > { %p499_p11 = scmp.ne.s32.totalorder %s697_s4, %s498_s18  ;;  %s503_s26 = sshll.u32 %s613_s19, 4  ;;  %s504_s26 = int_to_ptr.vmem [resolvable:$false] %s503_s26 }
  0x20   : > { %s505_s27 = scalar_lea.vmem %s504_s26, 256  ;;  %p506_p10 = scmp.lt.s32.totalorder %s697_s4, %s504_s26 }
  0x21   : > { %p501_p13 = pnand %p499_p11, %p706_p12  ;;  %p507_p7 = scmp.lt.s32.totalorder %s505_s27, %s498_s18 }
  0x23   : > { %p502_p9 = pneg %p501_p13  ;;  %p508_p1 = por %p507_p7, %p506_p10 }
  0x25   : > { %p509_p2 = pnand %p508_p1, %p502_p9 }
  0x27   : > { %512 = shalt.err (!%p509_p2)
}
  0x28   : > { %442 = dma.hbm_to_vmem [thread:$0]  (!%p684_p8), %s693_s29, 128, %s697_s4, %s700_s5  }
  0x29   : > { %p835_p0 = scmp.lt.s32.totalorder %s611_s15, 4  ;;  %p836_p3 = scmp.ge.s32.totalorder %s611_s15, 1 }
  0x2a   : > { %s742_s8 = scalar_lea.hbm %s826_s0, %s682_s24  ;;  %s145_s9 = scalar_lea.vmem [#allocation2], %s679_s23 }
  0x2b   : > { %p734_p4 = pnand %p836_p3, %p835_p0  ;;  %s152_s10 = sshll.u32 %s145_s9, 4  ;;  %s745_s10 = int_to_ptr.vmem [resolvable:$true] %s152_s10 }
  0x2c   : > { %s751_s15 = scalar_lea.hbm %s828_s2, %s682_s24  ;;  %s142_s11 = scalar_lea.sflag [#allocation3], %s141_s22 }
  0x2d   : > { %s837_s28 = scalar_select %p734_p4, 1, 0 }
  0x2e   : > { %s513_s12 = scalar_lea.hbm %s742_s8, 128  ;;  %s518_s26 = scalar_lea.hbm %s826_s0, 384 }
  0x2f   : > { %p514_p7 = scmp.ne.s32.totalorder %s742_s8, %s513_s12  ;;  %p519_p5 = scmp.lt.u32.totalorder %s742_s8, %s826_s0 }
  0x30   : > { %p520_p6 = scmp.lt.u32.totalorder %s518_s26, %s513_s12  ;;  %p522_p13 = scmp.lt.u32.totalorder %s513_s12, %s742_s8 }
  0x31   : > { %p516_p9 = pnand %p514_p7, %p706_p12 }
  0x32   : > { %p521_p11 = por %p520_p6, %p519_p5 }
  0x33   : > { %p517_p10 = pneg %p516_p9 }
  0x34   : > { %p523_p1 = por %p522_p13, %p521_p11 }
  0x36   : > { %p524_p2 = pnand %p523_p1, %p517_p10 }
  0x38   : > { %527 = shalt.err (!%p524_p2)
}
  0x39   : > { %s528_s22 = scalar_lea.vmem %s745_s10, 128  ;;  %s614_s24 = smov [#allocation2]  }
  0x3a   : > { %p529_p0 = scmp.ne.s32.totalorder %s745_s10, %s528_s22  ;;  %s533_s6 = sshll.u32 %s614_s24, 4  ;;  %s534_s6 = int_to_ptr.vmem [resolvable:$false] %s533_s6 }
  0x3b   : > { %s535_s9 = scalar_lea.vmem %s534_s6, 256  ;;  %p536_p9 = scmp.lt.s32.totalorder %s745_s10, %s534_s6 }
  0x3c   : > { %p531_p3 = pnand %p529_p0, %p706_p12  ;;  %p537_p4 = scmp.lt.s32.totalorder %s535_s9, %s528_s22 }
  0x3e   : > { %p532_p7 = pneg %p531_p3  ;;  %p538_p5 = por %p537_p4, %p536_p9 }
  0x40   : > { %p539_p6 = pnand %p538_p5, %p532_p7 }
  0x42   : > { %542 = shalt.err (!%p539_p6)
}
  0x43   : > { %439 = dma.hbm_to_vmem [thread:$0]  (!%p684_p8), %s742_s8, 128, %s745_s10, %s142_s11  }
  0x44   : > { %s181_s29 = scalar_lea.vmem [#allocation6], %s679_s23  ;;  %s543_s12 = scalar_lea.hbm %s751_s15, 128 }
  0x45   : > { %s188_s4 = sshll.u32 %s181_s29, 4  ;;  %p544_p10 = scmp.ne.s32.totalorder %s751_s15, %s543_s12  ;;  %s189_s4 = int_to_ptr.vmem [resolvable:$true] %s188_s4 }
  0x46   : > { %s548_s26 = scalar_lea.hbm %s828_s2, 384  ;;  %p549_p13 = scmp.lt.u32.totalorder %s751_s15, %s828_s2 }
  0x47   : > { %p546_p4 = pnand %p544_p10, %p706_p12  ;;  %p550_p1 = scmp.lt.u32.totalorder %s548_s26, %s543_s12 }
  0x48   : > { %p552_p0 = scmp.lt.u32.totalorder %s543_s12, %s751_s15 }
  0x49   : > { %p547_p11 = pneg %p546_p4  ;;  %p551_p2 = por %p550_p1, %p549_p13 }
  0x4b   : > { %p553_p3 = por %p552_p0, %p551_p2 }
  0x4d   : > { %p554_p7 = pnand %p553_p3, %p547_p11 }
  0x4f   : > { %557 = shalt.err (!%p554_p7)
}
  0x50   : > { %s558_s23 = scalar_lea.vmem %s189_s4, 128  ;;  %s615_s8 = smov [#allocation6]  }
  0x51   : > { %p559_p9 = scmp.ne.s32.totalorder %s189_s4, %s558_s23  ;;  %s563_s10 = sshll.u32 %s615_s8, 4  ;;  %s564_s10 = int_to_ptr.vmem [resolvable:$false] %s563_s10 }
  0x52   : > { %s565_s11 = scalar_lea.vmem %s564_s10, 256  ;;  %p566_p10 = scmp.lt.s32.totalorder %s189_s4, %s564_s10 }
  0x53   : > { %p561_p5 = pnand %p559_p9, %p706_p12  ;;  %p567_p4 = scmp.lt.s32.totalorder %s565_s11, %s558_s23 }
  0x55   : > { %p562_p6 = pneg %p561_p5  ;;  %p568_p8 = por %p567_p4, %p566_p10 }
  0x57   : > { %p569_p1 = pnand %p568_p8, %p562_p6 }
  0x59   : > { %572 = shalt.err (!%p569_p1)
}
  0x5a   : > { %p838_p13 = scmp.ne.s32.totalorder %s833_s25, 0  ;;  %p839_p11 = scmp.ne.s32.totalorder %s837_s28, 0 }
  0x5b   : > { %s199_s7 = sand.u32 (!%p839_p11), 1, %s603_s13   ;;  %p840_p12 = scmp.ne.s32.totalorder (!%p839_p11), %s832_s21, 0 }
  0x5c   : > { %445 = dma.hbm_to_vmem [thread:$0]  (!%p838_p13), %s751_s15, 128, %s189_s4, %s700_s5  }
  0x5d   : > { %197 = sbr.rel (%p839_p11) target bundleno = 488 (0x1e8), region = 32  ;;  %s422_s22 = sshll.u32 (!%p839_p11), %s199_s7, 3 }
  0x5e   : > { %s200_s24 = scalar_lea.sflag (!%p839_p11), [#allocation3], %s199_s7  ;;  %s203_s6 = scalar_lea.vmem (!%p839_p11), [#allocation2], %s422_s22 }
  0x64   : > { %590 = dma.done.wait (%p840_p12), %s200_s24, 128  }
  0x65   : > { %592 = vsyncadd (%p840_p12), %s200_s24, 4294967168  ;;  %s208_s25 = sand.u32 1, %s655_s16   ;;  %s212_s29 = scalar_lea.vmem [#allocation4], %s422_s22 }
  0x66   : > { %s209_s9 = scalar_lea.sflag [#allocation5], %s208_s25 }
  0x67   : > { %594 = dma.done.wait (%p840_p12), %s209_s9, 256  }
  0x68   : > { %596 = vsyncadd (%p840_p12), %s209_s9, 4294967040  ;;  %s221_s5 = scalar_lea.vmem [#allocation6], %s422_s22  ;;  %v255_v1 = vld [vmem:[%s203_s6] sm:$0xff]  ;;  %v256_v2 = vld [vmem:[%s212_s29] sm:$0xff]  ;;  %v290_v20 = vlaneseq  ;;  %s425_s21 = sshll.u32 %s655_s16, 3  ;;  %vm296_vm1 = vcmask 7168  }
  0x69   : > { %v257_v0 = vld [vmem:[%s221_s5] sm:$0xff]  ;;  %v258_v4 = vmul.f32 %v255_v1, %v255_v1  ;;  %v262_v5 = vmul.f32 %v256_v2, %v256_v2  ;;  %v270_v6 = vmul.f32 %v256_v2, %v255_v1  ;;  %v292_v26 = vstv %s425_s21  ;;  %p252_p8 = scmp.lt.s32.totalorder %s655_s16, 2 }
  0x6a   : > { %v266_v3 = vmul.f32 %v257_v0, %v257_v0  ;;  %v273_v7 = vmul.f32 %v257_v0, %v255_v1  ;;  %v291_v24 = vshrl.u32 %v290_v20, 7  ;;  %vm308_vm2 = vcmask 0  }
  0x6b   : > { %259 = vadd.xlane.f32.xlu0 %v258_v4  ;;  %s846_s16 = smov (!%p252_p8, %s655_s16), 2 }
  0x6c   : > { %267 = vadd.xlane.f32.xlu1 %v266_v3  ;;  %v293_v29 = vadd.s32 %v292_v26, %v291_v24  ;;  %s254_s4 = scalar_lea.vmem %s829_s3, %s846_s16 }
  0x6e   : > { %vm294_vm0 = vcmp.lt.s32.totalorder %v293_v29, 20 }
  0x6f   : > { %263 = vadd.xlane.f32.xlu0 %v262_v5 }
  0x70   : > { %271 = vadd.xlane.f32.xlu1 %v270_v6 }
  0x73   : > { %274 = vadd.xlane.f32.xlu0 %v273_v7 }
  0xf8   : > { %v260_v9 = vpop.xlane.xlu0 %259 }
  0xf9   : > { %v268_v8 = vpop.xlane.xlu1 %267  ;;  %v261_v11 = vmax.f32 %v260_v9, 1e-16 }
  0xfa   : > { %v269_v10 = vmax.f32 %v268_v8, 1e-16 }
  0xfc   : > { %v279_v12 = vmul.f32 %v269_v10, %v261_v11  ;;  %v264_v13 = vpop.xlane.xlu0 %263 }
  0xfd   : > { %v265_v14 = vmax.f32 %v264_v13, 1e-16  ;;  %v272_v19 = vpop.xlane.xlu1 %271 }
  0xfe   : > { %479 = vrsqrt.f32 %v279_v12 }
  0xff   : > { %v276_v15 = vmul.f32 %v265_v14, %v261_v11 }
 0x100   : > { %v275_v16 = vpop.xlane.xlu0 %274 }
 0x101   : > { %481 = vrsqrt.f32 %v276_v15 }
 0x108   : > { %v480_v17 = vpop.eup %479 }
 0x109   : > { %v281_v18 = vmul.f32 %v480_v17, %v275_v16 }
 0x10b   : > { %v482_v21 = vpop.eup %481  ;;  %v284_v22 = vmax.f32 %v281_v18, 0.0 }
 0x10c   : > { %v278_v23 = vmul.f32 %v482_v21, %v272_v19 }
 0x10d   : > { %v285_v27 = vsub.f32 1.0, %v284_v22 }
 0x10e   : > { %v282_v25 = vmax.f32 %v278_v23, 0.0 }
 0x110   : > { %v283_v28 = vsub.f32 1.0, %v282_v25 }
 0x112   : > { %v286_v30 = vsub.f32 %v283_v28, %v285_v27 }
 0x114   : > { %v287_v31 = vadd.f32 5.0, %v286_v30 }
 0x116   : > { %v288_v32 = vmax.f32 %v287_v31, 0.0 }
 0x118   : > { %v295_v33 = vsel %vm294_vm0, %v288_v32, 0.0 }
 0x119   : > { %v297_v34 = vsel %vm296_vm1, %v295_v33, 0.0 }
 0x11a   : > { %298 = vadd.xlane.f32.xlu1 %v297_v34 }
 0x1a7   : > { %v299_v35 = vpop.xlane.xlu1 %298 }
 0x1a8   : > { %v300_v36 = vrot.slane %v299_v35, 4 }
 0x1aa   : > { %v301_v37 = vadd.f32 %v300_v36, %v299_v35 }
 0x1ac   : > { %v302_v38 = vrot.slane %v301_v37, 2 }
 0x1ae   : > { %v303_v39 = vadd.f32 %v302_v38, %v301_v37 }
 0x1b0   : > { %v304_v40 = vrot.slane %v303_v39, 1 }
 0x1b2   : > { %v305_v41 = vadd.f32 %v304_v40, %v303_v39 }
 0x1b4   : > { %428 = vpush %v305_v41 }
 0x1e5   : > { %s429_s12 = spop %428 }
 0x1e6   : > { %v307_v42 = vstv %s429_s12 }
 0x1e7   : > { %309 = vst.msk [vmem:[%s254_s4] sm:$0x1] %vm308_vm2, %v307_v42 }
 0x1e8 PF: > { %p16_p2 = scmp.ge.s32.totalorder %s658_s17, 5   ;;  %s841_s12 = smov %s603_s13 }
 0x1e9   : > { %s842_s13 = smov %s607_s14  ;;  %s843_s14 = smov %s668_s20 }
 0x1ea   : > { %s844_s15 = smov %s658_s17  ;;  %18 = sbr.rel (!%p16_p2) target bundleno = 5 (0x5), region = 96 }
 0x1f1   :  { %327 = vsyncpa [#allocation3], 1 }
 0x1f2   :  { %329 = vsyncpa [#allocation3 + $0x1], 1 }
 0x1f3   :  { %330 = vsyncpa [#allocation5], 1 }
 0x1f4   :  { %332 = vsyncpa [#allocation5 + $0x1], 1 }

</bundles_post_ra>
